<compile_context>
chip_gen: v7x
topology: tpu7x:2x2x1
jax: 0.10.0
libtpu: 0.0.40
codegen_flags: <defaults>
</compile_context>

<pallas_src>
import jax
import jax.numpy as jnp
from jax.experimental import pallas as pl
from jax.experimental.pallas import tpu as pltpu

IN_FEATURES = 28 * 28       # 784 (multiple of 8 -> legal sublane dim for W1)
HIDDEN = 128
OUT_FEATURES = 64
MIN_TB = 16                 # bf16 packs 16 rows / vreg sublane group
MAX_TB = 1024               # batch-tile rows per grid step (sweep 1024-2048)


def _mlp_kernel(x_ref, w1_ref, b1_ref, w2_ref, b2_ref, o_ref):
    # relu(relu(x @ W1 + b1) @ W2 + b2): bf16 operands, f32 MXU accumulation.
    # x arrives as f32 straight from HBM; VPU cast is free under the DMA.
    x = x_ref[...].astype(jnp.bfloat16)
    h = jnp.dot(x, w1_ref[...], preferred_element_type=jnp.float32)
    h = jnp.maximum(h + b1_ref[...], 0.0)
    o = jnp.dot(h.astype(jnp.bfloat16), w2_ref[...],
                preferred_element_type=jnp.float32)
    o_ref[...] = jnp.maximum(o + b2_ref[...], 0.0).astype(o_ref.dtype)


def _choose_tile(batch):
    """Tile rows (multiple of 16) and padded batch; keep >=2 grid steps when
    the batch allows so both v7x TensorCores get work."""
    rows = pl.cdiv(batch, MIN_TB) * MIN_TB
    tb = min(MAX_TB, rows)
    if rows > MIN_TB and pl.cdiv(rows, tb) < 2:
        tb = pl.cdiv(pl.cdiv(rows, 2), MIN_TB) * MIN_TB
    b_pad = pl.cdiv(batch, tb) * tb
    return tb, b_pad


def _resident_spec(block_shape, single_buffer):
    # Constant index_map -> operand stays VMEM-resident across grid steps.
    if single_buffer:
        return pl.BlockSpec(block_shape, lambda i: (0, 0),
                            pipeline_mode=pl.Buffered(1))
    return pl.BlockSpec(block_shape, lambda i: (0, 0))


def _forward(x_nchw, w1, b1, w2, b2, *, single_buffer_weights):
    B = x_nchw.shape[0]
    TB, B_pad = _choose_tile(B)
    grid = (B_pad // TB,)

    # torch.nn.Flatten on contiguous NCHW == row-major reshape.  x stays f32;
    # only the (rare) batch pad touches HBM in the wrapper.
    x = x_nchw.reshape(B, IN_FEATURES)
    if B_pad != B:
        x = jnp.pad(x, ((0, B_pad - B), (0, 0)))

    w1b = w1.astype(jnp.bfloat16)                       # (784, 128), resident
    w2b = w2.astype(jnp.bfloat16)                       # (128, 64),  resident
    b1r = b1.astype(jnp.float32).reshape(1, HIDDEN)
    b2r = b2.astype(jnp.float32).reshape(1, OUT_FEATURES)

    flops = 2 * B_pad * (IN_FEATURES * HIDDEN + HIDDEN * OUT_FEATURES)
    bytes_accessed = (x.size * 4 + w1b.size * 2 + w2b.size * 2
                      + b1r.size * 4 + b2r.size * 4
                      + B_pad * OUT_FEATURES * 4)

    out = pl.pallas_call(
        _mlp_kernel,
        out_shape=jax.ShapeDtypeStruct((B_pad, OUT_FEATURES), jnp.float32),
        grid=grid,
        in_specs=[
            # x streamed f32: (TB, 784); last dim == full array dim -> legal.
            pl.BlockSpec((TB, IN_FEATURES), lambda i: (i, 0)),
            _resident_spec((IN_FEATURES, HIDDEN), single_buffer_weights),
            _resident_spec((1, HIDDEN), single_buffer_weights),
            _resident_spec((HIDDEN, OUT_FEATURES), single_buffer_weights),
            _resident_spec((1, OUT_FEATURES), single_buffer_weights),
        ],
        out_specs=pl.BlockSpec((TB, OUT_FEATURES), lambda i: (i, 0)),
        compiler_params=pltpu.CompilerParams(
            dimension_semantics=("parallel",),          # 2 TCs on v7x
            vmem_limit_bytes=32 * 1024 * 1024),         # headroom incl. v5e
        cost_estimate=pl.CostEstimate(
            flops=flops, transcendentals=0, bytes_accessed=bytes_accessed),
    )(x, w1b, b1r, w2b, b2r)

    return out if B_pad == B else out[:B]


def mnist_client_forward(x_nchw, w1, b1, w2, b2):
    """x_nchw: (B, 1, 28, 28) float32. Returns (B, 64) float32."""
    try:
        return _forward(x_nchw, w1, b1, w2, b2, single_buffer_weights=True)
    except Exception:
        # Fallback if pipeline_mode / pl.Buffered(1) is unsupported here.
        return _forward(x_nchw, w1, b1, w2, b2, single_buffer_weights=False)


def init_params(key):
    """Deterministic init mimicking torch.nn.Linear defaults (U(-1/sqrt(fan_in), +))."""
    k1, k2, k3, k4 = jax.random.split(key, 4)
    lim1 = 1.0 / jnp.sqrt(jnp.float32(IN_FEATURES))
    lim2 = 1.0 / jnp.sqrt(jnp.float32(HIDDEN))
    w1 = jax.random.uniform(k1, (IN_FEATURES, HIDDEN), jnp.float32, -lim1, lim1)
    b1 = jax.random.uniform(k2, (HIDDEN,), jnp.float32, -lim1, lim1)
    w2 = jax.random.uniform(k3, (HIDDEN, OUT_FEATURES), jnp.float32, -lim2, lim2)
    b2 = jax.random.uniform(k4, (OUT_FEATURES,), jnp.float32, -lim2, lim2)
    return w1, b1, w2, b2


if __name__ == "__main__":
    key = jax.random.PRNGKey(0)
    kx, kp = jax.random.split(key)
    B = 2
    x = jax.random.normal(kx, (B, 1, 28, 28), jnp.float32)
    w1, b1, w2, b2 = init_params(kp)

    out = mnist_client_forward(x, w1, b1, w2, b2)
    out = jax.block_until_ready(out)
    assert out.shape == (B, OUT_FEATURES)

    # Pure-JAX reference matching the kernel's bf16-operand / f32-accumulate math.
    xf = x.reshape(B, IN_FEATURES)
    h_ref = jnp.maximum(
        jnp.dot(xf.astype(jnp.bfloat16), w1.astype(jnp.bfloat16),
                preferred_element_type=jnp.float32) + b1, 0.0)
    ref_bf16 = jnp.maximum(
        jnp.dot(h_ref.astype(jnp.bfloat16), w2.astype(jnp.bfloat16),
                preferred_element_type=jnp.float32) + b2, 0.0)
    assert jnp.allclose(out, ref_bf16, atol=2e-2, rtol=2e-2)

    # Loose check against the exact f32 torch-equivalent forward.
    ref_f32 = jnp.maximum(jnp.maximum(xf @ w1 + b1, 0.0) @ w2 + b2, 0.0)
    assert jnp.allclose(out, ref_f32, atol=1e-1)

    print("KERNEL_OK")
</pallas_src>

<mosaic_0001>
module attributes {stable_mosaic.version = 11 : i64} {
  func.func @_mlp_kernel(%arg0: i32, %arg1: memref<16x784xf32, #tpu.memory_space<vmem>>, %arg2: memref<784x128xbf16, #tpu.memory_space<vmem>>, %arg3: memref<1x128xf32, #tpu.memory_space<vmem>>, %arg4: memref<128x64xbf16, #tpu.memory_space<vmem>>, %arg5: memref<1x64xf32, #tpu.memory_space<vmem>>, %arg6: memref<16x64xf32, #tpu.memory_space<vmem>>) attributes {dimension_semantics = [#tpu.dimension_semantics<parallel>], iteration_bounds = array<i64: 1>, scalar_prefetch = 0 : i64, scratch_operands = 0 : i64, tpu.core_type = #tpu.core_type<tc>, window_params = [{transform_indices = @transform_0, window_bounds = array<i64: 16, 784>}, {pipeline_mode = #tpu.pipeline_mode<synchronous>, transform_indices = @transform_1, window_bounds = array<i64: 784, 128>}, {pipeline_mode = #tpu.pipeline_mode<synchronous>, transform_indices = @transform_2, window_bounds = array<i64: 1, 128>}, {pipeline_mode = #tpu.pipeline_mode<synchronous>, transform_indices = @transform_3, window_bounds = array<i64: 128, 64>}, {pipeline_mode = #tpu.pipeline_mode<synchronous>, transform_indices = @transform_4, window_bounds = array<i64: 1, 64>}, {transform_indices = @transform_5, window_bounds = array<i64: 16, 64>}]} {
    %c0 = arith.constant 0 : index
    %c0_0 = arith.constant 0 : index
    %0 = vector.load %arg1[%c0, %c0_0] : memref<16x784xf32, #tpu.memory_space<vmem>>, vector<16x784xf32>
    %1 = arith.truncf %0 : vector<16x784xf32> to vector<16x784xbf16>
    %c0_1 = arith.constant 0 : index
    %c0_2 = arith.constant 0 : index
    %2 = vector.load %arg2[%c0_1, %c0_2] : memref<784x128xbf16, #tpu.memory_space<vmem>>, vector<784x128xbf16>
    %cst = arith.constant dense<0.000000e+00> : vector<16x128xf32>
    %3 = tpu.matmul %1, %2, %cst {dimension_numbers = #tpu.dot_dimension_numbers<[1], [0], [0], [1], [0, 0, 1, 1], [], []>} : vector<16x784xbf16>, vector<784x128xbf16>, vector<16x128xf32> -> vector<16x128xf32>
    %c0_3 = arith.constant 0 : index
    %c0_4 = arith.constant 0 : index
    %4 = vector.load %arg3[%c0_3, %c0_4] : memref<1x128xf32, #tpu.memory_space<vmem>>, vector<1x128xf32>
    %5 = vector.broadcast %4 : vector<1x128xf32> to vector<16x128xf32>
    %6 = arith.addf %3, %5 : vector<16x128xf32>
    %cst_5 = arith.constant 0.000000e+00 : f32
    %7 = vector.broadcast %cst_5 : f32 to vector<16x128xf32>
    %8 = arith.maximumf %6, %7 : vector<16x128xf32>
    %9 = arith.truncf %8 : vector<16x128xf32> to vector<16x128xbf16>
    %c0_6 = arith.constant 0 : index
    %c0_7 = arith.constant 0 : index
    %10 = vector.load %arg4[%c0_6, %c0_7] : memref<128x64xbf16, #tpu.memory_space<vmem>>, vector<128x64xbf16>
    %cst_8 = arith.constant dense<0.000000e+00> : vector<16x64xf32>
    %11 = tpu.matmul %9, %10, %cst_8 {dimension_numbers = #tpu.dot_dimension_numbers<[1], [0], [0], [1], [0, 0, 1, 1], [], []>} : vector<16x128xbf16>, vector<128x64xbf16>, vector<16x64xf32> -> vector<16x64xf32>
    %c0_9 = arith.constant 0 : index
    %c0_10 = arith.constant 0 : index
    %12 = vector.load %arg5[%c0_9, %c0_10] : memref<1x64xf32, #tpu.memory_space<vmem>>, vector<1x64xf32>
    %13 = vector.broadcast %12 : vector<1x64xf32> to vector<16x64xf32>
    %14 = arith.addf %11, %13 : vector<16x64xf32>
    %cst_11 = arith.constant 0.000000e+00 : f32
    %15 = vector.broadcast %cst_11 : f32 to vector<16x64xf32>
    %16 = arith.maximumf %14, %15 : vector<16x64xf32>
    %c0_12 = arith.constant 0 : index
    %c0_13 = arith.constant 0 : index
    %17 = vector.load %arg6[%c0_12, %c0_13] : memref<16x64xf32, #tpu.memory_space<vmem>>, vector<16x64xf32>
    tpu.vector_store %arg6[%c0_12, %c0_13], %16 {strides = array<i32>} : memref<16x64xf32, #tpu.memory_space<vmem>>, vector<16x64xf32>,
    return
  }
  func.func @transform_0(%arg0: i32) -> (i32, i32) {
    %c0_i32 = arith.constant 0 : i32
    %c0_i32_0 = arith.constant 0 : i32
    return %arg0, %c0_i32 : i32, i32
  }
  func.func @transform_1(%arg0: i32) -> (i32, i32) {
    %c0_i32 = arith.constant 0 : i32
    %c0_i32_0 = arith.constant 0 : i32
    %c0_i32_1 = arith.constant 0 : i32
    return %c0_i32, %c0_i32_0 : i32, i32
  }
  func.func @transform_2(%arg0: i32) -> (i32, i32) {
    %c0_i32 = arith.constant 0 : i32
    %c0_i32_0 = arith.constant 0 : i32
    %c0_i32_1 = arith.constant 0 : i32
    return %c0_i32, %c0_i32_0 : i32, i32
  }
  func.func @transform_3(%arg0: i32) -> (i32, i32) {
    %c0_i32 = arith.constant 0 : i32
    %c0_i32_0 = arith.constant 0 : i32
    %c0_i32_1 = arith.constant 0 : i32
    return %c0_i32, %c0_i32_0 : i32, i32
  }
  func.func @transform_4(%arg0: i32) -> (i32, i32) {
    %c0_i32 = arith.constant 0 : i32
    %c0_i32_0 = arith.constant 0 : i32
    %c0_i32_1 = arith.constant 0 : i32
    return %c0_i32, %c0_i32_0 : i32, i32
  }
  func.func @transform_5(%arg0: i32) -> (i32, i32) {
    %c0_i32 = arith.constant 0 : i32
    %c0_i32_0 = arith.constant 0 : i32
    return %arg0, %c0_i32 : i32, i32
  }
}

module attributes {stable_mosaic.version = 11 : i64} {
  func.func @_mlp_kernel(%arg0: i32, %arg1: memref<16x784xf32, #tpu.memory_space<vmem>>, %arg2: memref<784x128xbf16, #tpu.memory_space<vmem>>, %arg3: memref<1x128xf32, #tpu.memory_space<vmem>>, %arg4: memref<128x64xbf16, #tpu.memory_space<vmem>>, %arg5: memref<1x64xf32, #tpu.memory_space<vmem>>, %arg6: memref<16x64xf32, #tpu.memory_space<vmem>>) attributes {dimension_semantics = [#tpu.dimension_semantics<parallel>], iteration_bounds = array<i64: 1>, scalar_prefetch = 0 : i64, scratch_operands = 0 : i64, tpu.core_type = #tpu.core_type<tc>, window_params = [{transform_indices = @transform_0, window_bounds = array<i64: 16, 784>}, {pipeline_mode = #tpu.pipeline_mode<synchronous>, transform_indices = @transform_1, window_bounds = array<i64: 784, 128>}, {pipeline_mode = #tpu.pipeline_mode<synchronous>, transform_indices = @transform_2, window_bounds = array<i64: 1, 128>}, {pipeline_mode = #tpu.pipeline_mode<synchronous>, transform_indices = @transform_3, window_bounds = array<i64: 128, 64>}, {pipeline_mode = #tpu.pipeline_mode<synchronous>, transform_indices = @transform_4, window_bounds = array<i64: 1, 64>}, {transform_indices = @transform_5, window_bounds = array<i64: 16, 64>}]} {
    %c0 = arith.constant 0 : index
    %c0_0 = arith.constant 0 : index
    %0 = vector.load %arg1[%c0, %c0_0] : memref<16x784xf32, #tpu.memory_space<vmem>>, vector<16x784xf32>
    %1 = arith.truncf %0 : vector<16x784xf32> to vector<16x784xbf16>
    %c0_1 = arith.constant 0 : index
    %c0_2 = arith.constant 0 : index
    %2 = vector.load %arg2[%c0_1, %c0_2] : memref<784x128xbf16, #tpu.memory_space<vmem>>, vector<784x128xbf16>
    %cst = arith.constant dense<0.000000e+00> : vector<16x128xf32>
    %3 = tpu.matmul %1, %2, %cst {dimension_numbers = #tpu.dot_dimension_numbers<[1], [0], [0], [1], [0, 0, 1, 1], [], []>} : vector<16x784xbf16>, vector<784x128xbf16>, vector<16x128xf32> -> vector<16x128xf32>
    %c0_3 = arith.constant 0 : index
    %c0_4 = arith.constant 0 : index
    %4 = vector.load %arg3[%c0_3, %c0_4] : memref<1x128xf32, #tpu.memory_space<vmem>>, vector<1x128xf32>
    %5 = vector.broadcast %4 : vector<1x128xf32> to vector<16x128xf32>
    %6 = arith.addf %3, %5 : vector<16x128xf32>
    %cst_5 = arith.constant 0.000000e+00 : f32
    %7 = vector.broadcast %cst_5 : f32 to vector<16x128xf32>
    %8 = arith.maximumf %6, %7 : vector<16x128xf32>
    %9 = arith.truncf %8 : vector<16x128xf32> to vector<16x128xbf16>
    %c0_6 = arith.constant 0 : index
    %c0_7 = arith.constant 0 : index
    %10 = vector.load %arg4[%c0_6, %c0_7] : memref<128x64xbf16, #tpu.memory_space<vmem>>, vector<128x64xbf16>
    %cst_8 = arith.constant dense<0.000000e+00> : vector<16x64xf32>
    %11 = tpu.matmul %9, %10, %cst_8 {dimension_numbers = #tpu.dot_dimension_numbers<[1], [0], [0], [1], [0, 0, 1, 1], [], []>} : vector<16x128xbf16>, vector<128x64xbf16>, vector<16x64xf32> -> vector<16x64xf32>
    %c0_9 = arith.constant 0 : index
    %c0_10 = arith.constant 0 : index
    %12 = vector.load %arg5[%c0_9, %c0_10] : memref<1x64xf32, #tpu.memory_space<vmem>>, vector<1x64xf32>
    %13 = vector.broadcast %12 : vector<1x64xf32> to vector<16x64xf32>
    %14 = arith.addf %11, %13 : vector<16x64xf32>
    %cst_11 = arith.constant 0.000000e+00 : f32
    %15 = vector.broadcast %cst_11 : f32 to vector<16x64xf32>
    %16 = arith.maximumf %14, %15 : vector<16x64xf32>
    %c0_12 = arith.constant 0 : index
    %c0_13 = arith.constant 0 : index
    %17 = vector.load %arg6[%c0_12, %c0_13] : memref<16x64xf32, #tpu.memory_space<vmem>>, vector<16x64xf32>
    tpu.vector_store %arg6[%c0_12, %c0_13], %16 {strides = array<i32>} : memref<16x64xf32, #tpu.memory_space<vmem>>, vector<16x64xf32>,
    return
  }
  func.func @transform_0(%arg0: i32) -> (i32, i32) {
    %c0_i32 = arith.constant 0 : i32
    %c0_i32_0 = arith.constant 0 : i32
    return %arg0, %c0_i32 : i32, i32
  }
  func.func @transform_1(%arg0: i32) -> (i32, i32) {
    %c0_i32 = arith.constant 0 : i32
    %c0_i32_0 = arith.constant 0 : i32
    %c0_i32_1 = arith.constant 0 : i32
    return %c0_i32, %c0_i32_0 : i32, i32
  }
  func.func @transform_2(%arg0: i32) -> (i32, i32) {
    %c0_i32 = arith.constant 0 : i32
    %c0_i32_0 = arith.constant 0 : i32
    %c0_i32_1 = arith.constant 0 : i32
    return %c0_i32, %c0_i32_0 : i32, i32
  }
  func.func @transform_3(%arg0: i32) -> (i32, i32) {
    %c0_i32 = arith.constant 0 : i32
    %c0_i32_0 = arith.constant 0 : i32
    %c0_i32_1 = arith.constant 0 : i32
    return %c0_i32, %c0_i32_0 : i32, i32
  }
  func.func @transform_4(%arg0: i32) -> (i32, i32) {
    %c0_i32 = arith.constant 0 : i32
    %c0_i32_0 = arith.constant 0 : i32
    %c0_i32_1 = arith.constant 0 : i32
    return %c0_i32, %c0_i32_0 : i32, i32
  }
  func.func @transform_5(%arg0: i32) -> (i32, i32) {
    %c0_i32 = arith.constant 0 : i32
    %c0_i32_0 = arith.constant 0 : i32
    return %arg0, %c0_i32 : i32, i32
  }
}

</mosaic_0001>

<bundles_post_ra>
// kernel: tpu_custom_call.1
= control target key start
LH: loop header
LB: loop body
LE: loop exit
PB: predicated region body
PF: predicated region fallthrough
CT: control target
= control target key end

     0   :  { %10 = vsyncpa [#allocation3], 0  ;;  %s1199_s0 = inlined_call_operand.hbm [shape: f32[16,784], index: 0, kind: input, shape index: {}]   ;;  %s1200_s1 = inlined_call_operand.hbm [shape: bf16[784,128], index: 1, kind: input, shape index: {}]   ;;  %s1201_s2 = inlined_call_operand.vmem [shape: f32[1,128], index: 2, kind: input, shape index: {}]   ;;  %s1202_s3 = inlined_call_operand.vmem [shape: bf16[128,64], index: 3, kind: input, shape index: {}]   ;;  %s1203_s4 = inlined_call_operand.vmem [shape: f32[1,64], index: 4, kind: input, shape index: {}]   ;;  %s1204_s5 = inlined_call_operand.hbm [shape: f32[16,64], index: 5, kind: output, shape index: {}]  }
   0x1   :  { %11 = vsyncpa [#allocation6], 0 }
   0x2   :  { %12 = vsyncpa [#allocation4], 0  ;;  %s1079_s18 = smov [#allocation2]   ;;  %s1007_s22 = scalar_lea.hbm %s1199_s0, 1792 }
   0x3   :  { %s18_s19 = sshll.u32 %s1079_s18, 4  ;;  %p1008_p0 = scmp.ne.s32.totalorder %s1199_s0, %s1007_s22  ;;  %s19_s19 = int_to_ptr.vmem [resolvable:$true] %s18_s19 }
   0x4   :  { %p1011_p1 = scmp.lt.u32.totalorder %s1007_s22, %s1199_s0 }
   0x6   :  { %p1013_p2 = pnand %p1011_p1, %p1008_p0 }
   0x8   :  { %1016 = shalt.err (!%p1013_p2)
}
   0x9   :  { %s1017_s27 = scalar_lea.vmem %s19_s19, 1792  ;;  %p1022_p4 = scmp.lt.s32.totalorder %s19_s19, %s19_s19 }
   0xa   :  { %p1018_p3 = scmp.ne.s32.totalorder %s19_s19, %s1017_s27  ;;  %p1023_p5 = scmp.lt.s32.totalorder %s1017_s27, %s1017_s27 }
   0xc   :  { %p1024_p6 = por %p1023_p5, %p1022_p4 }
   0xe   :  { %p1025_p7 = pnand %p1024_p6, %p1018_p3 }
  0x10   :  { %1028 = shalt.err (!%p1025_p7)
}
  0x11   :  { %s1080_s28 = smov 896   ;;  %s1081_s29 = smov 56  }
  0x12   :  { %24 = dma.hbm_to_vmem [thread:$0]  %s1199_s0, 1792, %s19_s19, [#allocation3], %s1080_s28, %s1080_s28, %s1081_s29  }
  0x13   :  { %s1082_s7 = smov [#allocation5]   ;;  %s1029_s11 = scalar_lea.hbm %s1200_s1, 6272 }
  0x14   :  { %s30_s8 = sshll.u32 %s1082_s7, 4  ;;  %p1030_p8 = scmp.ne.s32.totalorder %s1200_s1, %s1029_s11  ;;  %s31_s8 = int_to_ptr.vmem [resolvable:$true] %s30_s8 }
  0x15   :  { %p1033_p9 = scmp.lt.u32.totalorder %s1029_s11, %s1200_s1 }
  0x17   :  { %p1035_p10 = pnand %p1033_p9, %p1030_p8 }
  0x19   :  { %1038 = shalt.err (!%p1035_p10)
}
  0x1a   :  { %s1039_s16 = scalar_lea.vmem %s31_s8, 6272  ;;  %p1044_p12 = scmp.lt.s32.totalorder %s31_s8, %s31_s8 }
  0x1b   :  { %p1040_p11 = scmp.ne.s32.totalorder %s31_s8, %s1039_s16  ;;  %p1045_p13 = scmp.lt.s32.totalorder %s1039_s16, %s1039_s16 }
  0x1d   :  { %p1046_p0 = por %p1045_p13, %p1044_p12 }
  0x1f   :  { %p1047_p1 = pnand %p1046_p0, %p1040_p11 }
  0x21   :  { %1050 = shalt.err (!%p1047_p1)
}
  0x22   :  { %s1083_s0 = smov 64   ;;  %s1084_s17 = smov 4  }
  0x23   :  { %36 = dma.hbm_to_vmem [thread:$0]  %s1200_s1, 6272, %s31_s8, [#allocation6], %s1083_s0, %s1083_s0, %s1084_s17  }
  0x24   :  { %1073 = dma.done.wait [#allocation3], 1792  }
  0x25   :  { %1074 = vsyncadd [#allocation3], 4294965504 }
  0x26   :  { %1075 = dma.done.wait [#allocation6], 6272  }
  0x27   :  { %1076 = vsyncadd [#allocation6], 4294961024  ;;  %v950_v0 = vld [vmem:[#allocation5 + $0x40] sm:$0xff]   ;;  %v954_v4 = vld [vmem:[#allocation5 + $0x48] sm:$0xff]   ;;  %v1085_v43 = vmov 0.0   ;;  %vm1086_vm0 = vmmov 0  }
  0x28   :  { %v951_v1 = vld [vmem:[#allocation5] sm:$0xff]   ;;  %836 = vmatprep.subr.bf16.mxu0 %v950_v0  ;;  %v955_v5 = vld [vmem:[#allocation5 + $0x8] sm:$0xff]   ;;  %v958_v8 = vld [vmem:[#allocation5 + $0x50] sm:$0xff]   ;;  %vm470_vm1 = vcmask 130048   ;;  %vm755_vm2 = vcmask 523264   ;;  %s1087_s12 = smov [#allocation7]  }
  0x29   :  { %v952_v2 = vld [vmem:[#allocation5 + $0xc0] sm:$0xff]   ;;  %837 = vmatpush3.bf16.msra.mxu0 %v951_v1  ;;  %v956_v6 = vld [vmem:[#allocation5 + $0xc8] sm:$0xff]   ;;  %v959_v9 = vld [vmem:[#allocation5 + $0x10] sm:$0xff]   ;;  %s763_s13 = sshll.u32 %s1087_s12, 4  ;;  %s764_s13 = int_to_ptr.vmem [resolvable:$true] %s763_s13 }
  0x2a   :  { %v953_v3 = vld [vmem:[#allocation5 + $0x80] sm:$0xff]   ;;  %858 = vmatprep.subr.bf16.mxu1 %v952_v2  ;;  %838 = vmatprep.subr.bf16.mxu0 %v954_v4  ;;  %v957_v7 = vld [vmem:[#allocation5 + $0x88] sm:$0xff]   ;;  %v960_v10 = vld [vmem:[#allocation5 + $0xd0] sm:$0xff]   ;;  %s1051_s14 = scalar_lea.vmem %s764_s13, 256  ;;  %p1056_p3 = scmp.lt.s32.totalorder %s764_s13, %s764_s13 }
  0x2b   :  { %859 = vmatpush3.bf16.msra.mxu1 %v953_v3  ;;  %v961_v11 = vld [vmem:[#allocation5 + $0x90] sm:$0xff]   ;;  %v962_v12 = vld [vmem:[#allocation5 + $0x58] sm:$0xff]   ;;  %v966_v16 = vld [vmem:[#allocation5 + $0x60] sm:$0xff]   ;;  %p1052_p2 = scmp.ne.s32.totalorder %s764_s13, %s1051_s14  ;;  %p1057_p4 = scmp.lt.s32.totalorder %s1051_s14, %s1051_s14 }
  0x2c   :  { %860 = vmatprep.subr.bf16.mxu1 %v956_v6  ;;  %v963_v13 = vld [vmem:[#allocation5 + $0x18] sm:$0xff]   ;;  %v967_v17 = vld [vmem:[#allocation5 + $0x20] sm:$0xff]   ;;  %v970_v20 = vld [vmem:[#allocation5 + $0x68] sm:$0xff]  }
  0x2d   :  { %839 = vmatpush3.bf16.msra.mxu0 %v955_v5  ;;  %v964_v14 = vld [vmem:[#allocation5 + $0xd8] sm:$0xff]   ;;  %v968_v18 = vld [vmem:[#allocation5 + $0xe0] sm:$0xff]   ;;  %v971_v21 = vld [vmem:[#allocation5 + $0x28] sm:$0xff]   ;;  %p1058_p5 = por %p1057_p4, %p1056_p3 }
  0x2e   :  { %840 = vmatprep.subr.bf16.mxu0 %v958_v8  ;;  %v965_v15 = vld [vmem:[#allocation5 + $0x98] sm:$0xff]   ;;  %v969_v19 = vld [vmem:[#allocation5 + $0xa0] sm:$0xff]   ;;  %v972_v22 = vld [vmem:[#allocation5 + $0xe8] sm:$0xff]  }
  0x2f   :  { %861 = vmatpush3.bf16.msra.mxu1 %v957_v7  ;;  %v973_v23 = vld [vmem:[#allocation5 + $0xa8] sm:$0xff]   ;;  %v974_v24 = vld [vmem:[#allocation5 + $0x70] sm:$0xff]   ;;  %v978_v28 = vld [vmem:[#allocation5 + $0x78] sm:$0xff]   ;;  %p1059_p6 = pnand %p1058_p5, %p1052_p2 }
  0x30   :  { %862 = vmatprep.subr.bf16.mxu1 %v960_v10  ;;  %v975_v25 = vld [vmem:[#allocation5 + $0x30] sm:$0xff]   ;;  %v979_v29 = vld [vmem:[#allocation5 + $0x38] sm:$0xff]   ;;  %v57_v36 = vld [vmem:[#allocation2 + $0x38] sm:$0xff] }
  0x31   :  { %841 = vmatpush3.bf16.msra.mxu0 %v959_v9  ;;  %v976_v26 = vld [vmem:[#allocation5 + $0xf0] sm:$0xff]   ;;  %v980_v30 = vld [vmem:[#allocation5 + $0xf8] sm:$0xff]   ;;  %v982_v38 = vld [vmem:[#allocation5 + $0x140] sm:$0xff]  }
  0x32   :  { %842 = vmatprep.subr.bf16.mxu0 %v962_v12  ;;  %v977_v27 = vld [vmem:[#allocation5 + $0xb0] sm:$0xff]   ;;  %v51_v31 = vld [vmem:[#allocation2 + $0x8] sm:$0xff]  ;;  %v53_v39 = vld [vmem:[#allocation2 + $0x18] sm:$0xff] }
  0x33   :  { %863 = vmatpush3.bf16.msra.mxu1 %v961_v11  ;;  %v58_v32 = vld [vmem:[#allocation2 + $0x40] sm:$0xff]  ;;  %v981_v34 = vld [vmem:[#allocation5 + $0xb8] sm:$0xff]   ;;  %v60_v40 = vld [vmem:[#allocation2 + $0x50] sm:$0xff] }
  0x34   :  { %864 = vmatprep.subr.bf16.mxu1 %v964_v14  ;;  %v65_v33 = vpack.c.bf16 %v58_v32, %v51_v31  ;;  %v50_v35 = vld [vmem:[#allocation2] sm:$0xff]  ;;  %v67_v41 = vpack.c.bf16 %v60_v40, %v53_v39  ;;  %v983_v42 = vld [vmem:[#allocation5 + $0x100] sm:$0xff]   ;;  %v59_v45 = vld [vmem:[#allocation2 + $0x48] sm:$0xff] }
  0x35   :  { %843 = vmatpush3.bf16.msra.mxu0 %v963_v13  ;;  %v64_v37 = vpack.c.bf16 %v57_v36, %v50_v35  ;;  %v52_v44 = vld [vmem:[#allocation2 + $0x10] sm:$0xff]  ;;  %v984_v47 = vld [vmem:[#allocation5 + $0x148] sm:$0xff]   ;;  %v986_v49 = vld [vmem:[#allocation5 + $0x150] sm:$0xff]  }
  0x36   :  { %844 = vmatprep.subr.bf16.mxu0 %v966_v16  ;;  %506 = vmatprep.mubr.bf16.mxu0 %v65_v33  ;;  %v66_v46 = vpack.c.bf16 %v59_v45, %v52_v44  ;;  %v985_v48 = vld [vmem:[#allocation5 + $0x108] sm:$0xff]   ;;  %v987_v50 = vld [vmem:[#allocation5 + $0x110] sm:$0xff]   ;;  %v988_v51 = vld [vmem:[#allocation5 + $0x158] sm:$0xff]  }
  0x37   :  { %865 = vmatpush3.bf16.msra.mxu1 %v965_v15  ;;  %547 = vmatprep.mubr.bf16.mxu1 %v67_v41  ;;  %v989_v52 = vld [vmem:[#allocation5 + $0x118] sm:$0xff]   ;;  %v990_v53 = vld [vmem:[#allocation5 + $0x160] sm:$0xff]   ;;  %v992_v55 = vld [vmem:[#allocation5 + $0x168] sm:$0xff]  }
  0x38   :  { %866 = vmatprep.subr.bf16.mxu1 %v968_v18  ;;  %v991_v54 = vld [vmem:[#allocation5 + $0x120] sm:$0xff]   ;;  %v55_v57 = vld [vmem:[#allocation2 + $0x28] sm:$0xff]  ;;  %v993_v58 = vld [vmem:[#allocation5 + $0x128] sm:$0xff]  }
  0x39   :  { %845 = vmatpush3.bf16.msra.mxu0 %v967_v17  ;;  %v998_v56 = vld [vmem:[#allocation5 + $0x180] sm:$0xff]   ;;  %v994_v59 = vld [vmem:[#allocation5 + $0x170] sm:$0xff]   ;;  %v63_v63 = vld [vmem:[#allocation2 + $0x68] sm:$0xff] }
  0x3a   :  { %846 = vmatprep.subr.bf16.mxu0 %v970_v20  ;;  %v62_v60 = vld [vmem:[#allocation2 + $0x60] sm:$0xff]  ;;  %v56_v62 = vld [vmem:[#allocation2 + $0x30] sm:$0xff]  ;;  %v996_v2 = vld [vmem:[#allocation5 + $0x178] sm:$0xff]  }
  0x3b   :  { %867 = vmatpush3.bf16.msra.mxu1 %v969_v19  ;;  %v69_v61 = vpack.c.bf16 %v62_v60, %v55_v57  ;;  %v70_v0 = vpack.c.bf16 %v63_v63, %v56_v62  ;;  %v995_v1 = vld [vmem:[#allocation5 + $0x130] sm:$0xff]   ;;  %v997_v3 = vld [vmem:[#allocation5 + $0x138] sm:$0xff]   ;;  %v61_v5 = vld [vmem:[#allocation2 + $0x58] sm:$0xff] }
  0x3c   :  { %868 = vmatprep.subr.bf16.mxu1 %v972_v22  ;;  %v54_v4 = vld [vmem:[#allocation2 + $0x20] sm:$0xff]  ;;  %v1000_v8 = vld [vmem:[%s1202_s3 + $0x8] sm:$0xff]   ;;  %v1001_v9 = vld [vmem:[%s1202_s3 + $0x10] sm:$0xff]  }
  0x3d   :  { %847 = vmatpush3.bf16.msra.mxu0 %v971_v21  ;;  %v68_v6 = vpack.c.bf16 %v61_v5, %v54_v4  ;;  %v999_v7 = vld [vmem:[%s1202_s3] sm:$0xff]   ;;  %v1002_v10 = vld [vmem:[%s1202_s3 + $0x18] sm:$0xff]   ;;  %v1004_v12 = vld [vmem:[%s1202_s3 + $0x28] sm:$0xff]  }
  0x3e   :  { %848 = vmatprep.subr.bf16.mxu0 %v974_v24  ;;  %v1003_v11 = vld [vmem:[%s1202_s3 + $0x20] sm:$0xff]   ;;  %v1005_v13 = vld [vmem:[%s1202_s3 + $0x30] sm:$0xff]   ;;  %v1006_v14 = vld [vmem:[%s1202_s3 + $0x38] sm:$0xff]  }
  0x3f   :  { %869 = vmatpush3.bf16.msra.mxu1 %v973_v23  ;;  %v776_v16 = vld [vmem:[%s1201_s2] ss:$0 sm:$0xff] }
  0x40   :  { %870 = vmatprep.subr.bf16.mxu1 %v976_v26 }
  0x41   :  { %849 = vmatpush3.bf16.msra.mxu0 %v975_v25 }
  0x42   :  { %850 = vmatprep.subr.bf16.mxu0 %v978_v28 }
  0x43   :  { %871 = vmatpush3.bf16.msra.mxu1 %v977_v27 }
  0x44   :  { %872 = vmatprep.subr.bf16.mxu1 %v980_v30 }
  0x45   :  { %851 = vmatpush3.bf16.msra.mxu0 %v979_v29 }
  0x46   :  { %880 = vmatprep.subr.bf16.mxu0 %v982_v38 }
  0x47   :  { %873 = vmatpush3.bf16.msra.mxu1 %v981_v34 }
  0x48   :  { %913 = vmatprep.subr.bf16.mxu1 %v1085_v43  ;;  %507 = vmatmul.mubr.bf16.vlgmr.msra.gmra.mrb[0].mxu0 %v64_v37 }
  0x49   :  { %881 = vmatpush3.bf16.msra.mxu0 %v983_v42  ;;  %588 = vmatprep.mubr.bf16.mxu0 %v69_v61 }
  0x4a   :  { %548 = vmatmul.mubr.bf16.vlgmr.msra.gmra.mrb[0].mxu1 %v66_v46  ;;  %882 = vmatprep.subr.bf16.mxu0 %v984_v47 }
  0x4b   :  { %915 = vmatprep.mubr.msk.bf16.mxu1 %vm1086_vm0, %v1085_v43  ;;  %914 = vmatpush3.bf16.msra.mxu1 %v998_v56 }
  0x4c   :  { %919 = vmatprep.subr.bf16.mxu1 %v1085_v43 }
  0x4d   :  { %883 = vmatpush3.bf16.msra.mxu0 %v985_v48 }
  0x4e   :  { %884 = vmatprep.subr.bf16.mxu0 %v986_v49  ;;  %v827_v49 = vld [vmem:[%s1203_s4] ss:$0 sm:$0xff] }
  0x51   :  { %885 = vmatpush3.bf16.msra.mxu0 %v987_v50 }
  0x52   :  { %886 = vmatprep.subr.bf16.mxu0 %v988_v51  ;;  %916 = vmatmul.mubr.msk.bf16.vlgmr.msra.gmra.mrb[4].mxu1 %vm470_vm1, %v70_v0 }
  0x53   :  { %935 = vmatprep.mubr.msk.bf16.mxu1 %vm1086_vm0, %v1085_v43  ;;  %920 = vmatpush3.bf16.msra.mxu1 %v999_v7 }
  0x54   :  { %921 = vmatprep.subr.bf16.mxu1 %v1085_v43 }
  0x55   :  { %887 = vmatpush3.bf16.msra.mxu0 %v989_v52 }
  0x56   :  { %888 = vmatprep.subr.bf16.mxu0 %v990_v53 }
  0x57   :  { %922 = vmatpush3.bf16.msra.mxu1 %v1000_v8 }
  0x58   :  { %923 = vmatprep.subr.bf16.mxu1 %v1085_v43 }
  0x59   :  { %889 = vmatpush3.bf16.msra.mxu0 %v991_v54 }
  0x5a   :  { %890 = vmatprep.subr.bf16.mxu0 %v992_v55 }
  0x5b   :  { %924 = vmatpush3.bf16.msra.mxu1 %v1001_v9 }
  0x5c   :  { %925 = vmatprep.subr.bf16.mxu1 %v1085_v43 }
  0x5d   :  { %891 = vmatpush3.bf16.msra.mxu0 %v993_v58 }
  0x5e   :  { %892 = vmatprep.subr.bf16.mxu0 %v994_v59 }
  0x5f   :  { %926 = vmatpush3.bf16.msra.mxu1 %v1002_v10 }
  0x60   :  { %927 = vmatprep.subr.bf16.mxu1 %v1085_v43 }
  0x61   :  { %893 = vmatpush3.bf16.msra.mxu0 %v995_v1 }
  0x62   :  { %894 = vmatprep.subr.bf16.mxu0 %v996_v2 }
  0x63   :  { %928 = vmatpush3.bf16.msra.mxu1 %v1003_v11 }
  0x64   :  { %929 = vmatprep.subr.bf16.mxu1 %v1085_v43 }
  0x65   :  { %895 = vmatpush3.bf16.msra.mxu0 %v997_v3 }
  0x67   :  { %930 = vmatpush3.bf16.msra.mxu1 %v1004_v12 }
  0x68   :  { %589 = vmatmul.mubr.bf16.vlgmr.msra.gmra.mrb[4].mxu0 %v68_v6  ;;  %931 = vmatprep.subr.bf16.mxu1 %v1085_v43 }
  0x6b   :  { %932 = vmatpush3.bf16.msra.mxu1 %v1005_v13 }
  0x6c   :  { %933 = vmatprep.subr.bf16.mxu1 %v1085_v43 }
  0x6f   :  { %934 = vmatpush3.bf16.msra.mxu1 %v1006_v14 }
 0x11b   :  { %v852_v15 = vpop.f32.mrb[0].mxu0 }
 0x11c   :  { %v853_v17 = vpop.f32.mrb[1].mxu0 }
 0x11d   :  { %v854_v18 = vadd.f32 %v853_v17, %v852_v15  ;;  %v855_v19 = vpop.f32.mrb[2].mxu0  ;;  %v874_v20 = vpop.f32.mrb[0].mxu1 }
 0x11e   :  { %v856_v21 = vpop.f32.mrb[3].mxu0  ;;  %v875_v24 = vpop.f32.mrb[1].mxu1 }
 0x11f   :  { %v509_v22 = vadd.f32 %v854_v18, %v776_v16  ;;  %v857_v23 = vadd.f32 %v856_v21, %v855_v19  ;;  %v876_v25 = vadd.f32 %v875_v24, %v874_v20  ;;  %v877_v26 = vpop.f32.mrb[2].mxu1 }
 0x120   :  { %v878_v28 = vpop.f32.mrb[3].mxu1 }
 0x121   :  { %v512_v27 = vadd.f32 %v857_v23, %v776_v16  ;;  %v550_v29 = vadd.f32 %v876_v25, %v509_v22  ;;  %v879_v30 = vadd.f32 %v878_v28, %v877_v26 }
 0x123   :  { %v553_v31 = vadd.f32 %v879_v30, %v512_v27 }
 0x125   :  { %v631_v32 = vpop.f32.mrb[4].mxu1 }
 0x126   :  { %v917_v33 = vpop.f32.mrb[5].mxu1 }
 0x127   :  { %v634_v34 = vpop.f32.mrb[6].mxu1 }
 0x128   :  { %v918_v35 = vpop.f32.mrb[7].mxu1 }
 0x13b   :  { %v896_v36 = vpop.f32.mrb[4].mxu0 }
 0x13c   :  { %v897_v37 = vpop.f32.mrb[5].mxu0 }
 0x13d   :  { %v898_v38 = vadd.f32 %v897_v37, %v896_v36  ;;  %v899_v39 = vpop.f32.mrb[6].mxu0 }
 0x13e   :  { %v900_v40 = vpop.f32.mrb[7].mxu0 }
 0x13f   :  { %v591_v41 = vadd.f32 %v898_v38, %v550_v29  ;;  %v901_v42 = vadd.f32 %v900_v40, %v899_v39 }
 0x141   :  { %v632_v43 = vadd.f32 %v631_v32, %v591_v41  ;;  %v594_v44 = vadd.f32 %v901_v42, %v553_v31 }
 0x143   :  { %v635_v45 = vadd.f32 %v634_v34, %v594_v44  ;;  %v638_v46 = vmax.f32 %v632_v43, 0.0 }
 0x145   :  { %v639_v47 = vmax.f32 %v635_v45, 0.0 }
 0x147   :  { %v640_v48 = vpack.c.bf16 %v639_v47, %v638_v46 }
 0x149   :  { %936 = vmatmul.mubr.bf16.vlgmr.msra.gmra.mrb[8].mxu1 %v640_v48 }
 0x21c   :  { %v746_v50 = vpop.f32.mrb[8].mxu1 }
 0x21d   :  { %v747_v51 = vadd.f32 %v827_v49, %v746_v50  ;;  %v937_v52 = vpop.f32.mrb[9].mxu1 }
 0x21e   :  { %v749_v53 = vpop.f32.mrb[10].mxu1 }
 0x21f   :  { %v753_v54 = vmax.f32 %v747_v51, 0.0  ;;  %v750_v55 = vadd.f32 %v827_v49, %v749_v53  ;;  %v938_v56 = vpop.f32.mrb[11].mxu1 }
 0x221   :  { %756 = vst.msk [vmem:[#allocation7] sm:$0xff] %vm755_vm2, %v753_v54  ;;  %v754_v57 = vmax.f32 %v750_v55, 0.0 }
 0x223   :  { %757 = vst.msk [vmem:[#allocation7 + $0x8] sm:$0xff] %vm755_vm2, %v754_v57 }
 0x224   :  { %1062 = shalt.err (!%p1059_p6)
}
 0x225   :  { %s1063_s16 = scalar_lea.hbm %s1204_s5, 256 }
 0x226   :  { %p1064_p7 = scmp.ne.s32.totalorder %s1204_s5, %s1063_s16  ;;  %p1067_p8 = scmp.lt.u32.totalorder %s1063_s16, %s1204_s5 }
 0x228   :  { %p1069_p9 = pnand %p1067_p8, %p1064_p7 }
 0x22a   :  { %1072 = shalt.err (!%p1069_p9)
}
 0x22b   :  { %s1088_s1 = smov 128   ;;  %s1089_s20 = smov 8  }
 0x22c   :  { %769 = dma.vmem_to_hbm [thread:$0]  %s764_s13, 256, %s1204_s5, [#allocation4], %s1088_s1, %s1088_s1, %s1089_s20  }
 0x22d   :  { %1077 = dma.done.wait [#allocation4], 256  }
 0x22e   :  { %1078 = vsyncadd [#allocation4], 4294967040 }
 0x22f   :  { %773 = vsyncpa [#allocation3], 1 }
 0x230   :  { %774 = vsyncpa [#allocation6], 1 }
 0x231   :  { %775 = vsyncpa [#allocation4], 1 }

// kernel: tpu_custom_call.1
= control target key start
LH: loop header
LB: loop body
LE: loop exit
PB: predicated region body
PF: predicated region fallthrough
CT: control target
= control target key end

     0   :  { %10 = vsyncpa [#allocation3], 0  ;;  %s1199_s0 = inlined_call_operand.hbm [shape: f32[16,784], index: 0, kind: input, shape index: {}]   ;;  %s1200_s1 = inlined_call_operand.hbm [shape: bf16[784,128], index: 1, kind: input, shape index: {}]   ;;  %s1201_s2 = inlined_call_operand.vmem [shape: f32[1,128], index: 2, kind: input, shape index: {}]   ;;  %s1202_s3 = inlined_call_operand.vmem [shape: bf16[128,64], index: 3, kind: input, shape index: {}]   ;;  %s1203_s4 = inlined_call_operand.vmem [shape: f32[1,64], index: 4, kind: input, shape index: {}]   ;;  %s1204_s5 = inlined_call_operand.hbm [shape: f32[16,64], index: 5, kind: output, shape index: {}]  }
   0x1   :  { %11 = vsyncpa [#allocation6], 0 }
   0x2   :  { %12 = vsyncpa [#allocation4], 0  ;;  %s1079_s18 = smov [#allocation2]   ;;  %s1007_s22 = scalar_lea.hbm %s1199_s0, 1792 }
   0x3   :  { %s18_s19 = sshll.u32 %s1079_s18, 4  ;;  %p1008_p0 = scmp.ne.s32.totalorder %s1199_s0, %s1007_s22  ;;  %s19_s19 = int_to_ptr.vmem [resolvable:$true] %s18_s19 }
   0x4   :  { %p1011_p1 = scmp.lt.u32.totalorder %s1007_s22, %s1199_s0 }
   0x6   :  { %p1013_p2 = pnand %p1011_p1, %p1008_p0 }
   0x8   :  { %1016 = shalt.err (!%p1013_p2)
}
   0x9   :  { %s1017_s27 = scalar_lea.vmem %s19_s19, 1792  ;;  %p1022_p4 = scmp.lt.s32.totalorder %s19_s19, %s19_s19 }
   0xa   :  { %p1018_p3 = scmp.ne.s32.totalorder %s19_s19, %s1017_s27  ;;  %p1023_p5 = scmp.lt.s32.totalorder %s1017_s27, %s1017_s27 }
   0xc   :  { %p1024_p6 = por %p1023_p5, %p1022_p4 }
   0xe   :  { %p1025_p7 = pnand %p1024_p6, %p1018_p3 }
  0x10   :  { %1028 = shalt.err (!%p1025_p7)
}
  0x11   :  { %s1080_s28 = smov 896   ;;  %s1081_s29 = smov 56  }
  0x12   :  { %24 = dma.hbm_to_vmem [thread:$0]  %s1199_s0, 1792, %s19_s19, [#allocation3], %s1080_s28, %s1080_s28, %s1081_s29  }
  0x13   :  { %s1082_s7 = smov [#allocation5]   ;;  %s1029_s11 = scalar_lea.hbm %s1200_s1, 6272 }
  0x14   :  { %s30_s8 = sshll.u32 %s1082_s7, 4  ;;  %p1030_p8 = scmp.ne.s32.totalorder %s1200_s1, %s1029_s11  ;;  %s31_s8 = int_to_ptr.vmem [resolvable:$true] %s30_s8 }
  0x15   :  { %p1033_p9 = scmp.lt.u32.totalorder %s1029_s11, %s1200_s1 }
  0x17   :  { %p1035_p10 = pnand %p1033_p9, %p1030_p8 }
  0x19   :  { %1038 = shalt.err (!%p1035_p10)
}
  0x1a   :  { %s1039_s16 = scalar_lea.vmem %s31_s8, 6272  ;;  %p1044_p12 = scmp.lt.s32.totalorder %s31_s8, %s31_s8 }
  0x1b   :  { %p1040_p11 = scmp.ne.s32.totalorder %s31_s8, %s1039_s16  ;;  %p1045_p13 = scmp.lt.s32.totalorder %s1039_s16, %s1039_s16 }
  0x1d   :  { %p1046_p0 = por %p1045_p13, %p1044_p12 }
  0x1f   :  { %p1047_p1 = pnand %p1046_p0, %p1040_p11 }
  0x21   :  { %1050 = shalt.err (!%p1047_p1)
}
  0x22   :  { %s1083_s0 = smov 64   ;;  %s1084_s17 = smov 4  }
  0x23   :  { %36 = dma.hbm_to_vmem [thread:$0]  %s1200_s1, 6272, %s31_s8, [#allocation6], %s1083_s0, %s1083_s0, %s1084_s17  }
  0x24   :  { %1073 = dma.done.wait [#allocation3], 1792  }
  0x25   :  { %1074 = vsyncadd [#allocation3], 4294965504 }
  0x26   :  { %1075 = dma.done.wait [#allocation6], 6272  }
  0x27   :  { %1076 = vsyncadd [#allocation6], 4294961024  ;;  %v950_v0 = vld [vmem:[#allocation5 + $0x40] sm:$0xff]   ;;  %v954_v4 = vld [vmem:[#allocation5 + $0x48] sm:$0xff]   ;;  %v1085_v43 = vmov 0.0   ;;  %vm1086_vm0 = vmmov 0  }
  0x28   :  { %v951_v1 = vld [vmem:[#allocation5] sm:$0xff]   ;;  %836 = vmatprep.subr.bf16.mxu0 %v950_v0  ;;  %v955_v5 = vld [vmem:[#allocation5 + $0x8] sm:$0xff]   ;;  %v958_v8 = vld [vmem:[#allocation5 + $0x50] sm:$0xff]   ;;  %vm470_vm1 = vcmask 130048   ;;  %vm755_vm2 = vcmask 523264   ;;  %s1087_s12 = smov [#allocation7]  }
  0x29   :  { %v952_v2 = vld [vmem:[#allocation5 + $0xc0] sm:$0xff]   ;;  %837 = vmatpush3.bf16.msra.mxu0 %v951_v1  ;;  %v956_v6 = vld [vmem:[#allocation5 + $0xc8] sm:$0xff]   ;;  %v959_v9 = vld [vmem:[#allocation5 + $0x10] sm:$0xff]   ;;  %s763_s13 = sshll.u32 %s1087_s12, 4  ;;  %s764_s13 = int_to_ptr.vmem [resolvable:$true] %s763_s13 }
  0x2a   :  { %v953_v3 = vld [vmem:[#allocation5 + $0x80] sm:$0xff]   ;;  %858 = vmatprep.subr.bf16.mxu1 %v952_v2  ;;  %838 = vmatprep.subr.bf16.mxu0 %v954_v4  ;;  %v957_v7 = vld [vmem:[#allocation5 + $0x88] sm:$0xff]   ;;  %v960_v10 = vld [vmem:[#allocation5 + $0xd0] sm:$0xff]   ;;  %s1051_s14 = scalar_lea.vmem %s764_s13, 256  ;;  %p1056_p3 = scmp.lt.s32.totalorder %s764_s13, %s764_s13 }
  0x2b   :  { %859 = vmatpush3.bf16.msra.mxu1 %v953_v3  ;;  %v961_v11 = vld [vmem:[#allocation5 + $0x90] sm:$0xff]   ;;  %v962_v12 = vld [vmem:[#allocation5 + $0x58] sm:$0xff]   ;;  %v966_v16 = vld [vmem:[#allocation5 + $0x60] sm:$0xff]   ;;  %p1052_p2 = scmp.ne.s32.totalorder %s764_s13, %s1051_s14  ;;  %p1057_p4 = scmp.lt.s32.totalorder %s1051_s14, %s1051_s14 }
  0x2c   :  { %860 = vmatprep.subr.bf16.mxu1 %v956_v6  ;;  %v963_v13 = vld [vmem:[#allocation5 + $0x18] sm:$0xff]   ;;  %v967_v17 = vld [vmem:[#allocation5 + $0x20] sm:$0xff]   ;;  %v970_v20 = vld [vmem:[#allocation5 + $0x68] sm:$0xff]  }
  0x2d   :  { %839 = vmatpush3.bf16.msra.mxu0 %v955_v5  ;;  %v964_v14 = vld [vmem:[#allocation5 + $0xd8] sm:$0xff]   ;;  %v968_v18 = vld [vmem:[#allocation5 + $0xe0] sm:$0xff]   ;;  %v971_v21 = vld [vmem:[#allocation5 + $0x28] sm:$0xff]   ;;  %p1058_p5 = por %p1057_p4, %p1056_p3 }
  0x2e   :  { %840 = vmatprep.subr.bf16.mxu0 %v958_v8  ;;  %v965_v15 = vld [vmem:[#allocation5 + $0x98] sm:$0xff]   ;;  %v969_v19 = vld [vmem:[#allocation5 + $0xa0] sm:$0xff]   ;;  %v972_v22 = vld [vmem:[#allocation5 + $0xe8] sm:$0xff]  }
  0x2f   :  { %861 = vmatpush3.bf16.msra.mxu1 %v957_v7  ;;  %v973_v23 = vld [vmem:[#allocation5 + $0xa8] sm:$0xff]   ;;  %v974_v24 = vld [vmem:[#allocation5 + $0x70] sm:$0xff]   ;;  %v978_v28 = vld [vmem:[#allocation5 + $0x78] sm:$0xff]   ;;  %p1059_p6 = pnand %p1058_p5, %p1052_p2 }
  0x30   :  { %862 = vmatprep.subr.bf16.mxu1 %v960_v10  ;;  %v975_v25 = vld [vmem:[#allocation5 + $0x30] sm:$0xff]   ;;  %v979_v29 = vld [vmem:[#allocation5 + $0x38] sm:$0xff]   ;;  %v57_v36 = vld [vmem:[#allocation2 + $0x38] sm:$0xff] }
  0x31   :  { %841 = vmatpush3.bf16.msra.mxu0 %v959_v9  ;;  %v976_v26 = vld [vmem:[#allocation5 + $0xf0] sm:$0xff]   ;;  %v980_v30 = vld [vmem:[#allocation5 + $0xf8] sm:$0xff]   ;;  %v982_v38 = vld [vmem:[#allocation5 + $0x140] sm:$0xff]  }
  0x32   :  { %842 = vmatprep.subr.bf16.mxu0 %v962_v12  ;;  %v977_v27 = vld [vmem:[#allocation5 + $0xb0] sm:$0xff]   ;;  %v51_v31 = vld [vmem:[#allocation2 + $0x8] sm:$0xff]  ;;  %v53_v39 = vld [vmem:[#allocation2 + $0x18] sm:$0xff] }
  0x33   :  { %863 = vmatpush3.bf16.msra.mxu1 %v961_v11  ;;  %v58_v32 = vld [vmem:[#allocation2 + $0x40] sm:$0xff]  ;;  %v981_v34 = vld [vmem:[#allocation5 + $0xb8] sm:$0xff]   ;;  %v60_v40 = vld [vmem:[#allocation2 + $0x50] sm:$0xff] }
  0x34   :  { %864 = vmatprep.subr.bf16.mxu1 %v964_v14  ;;  %v65_v33 = vpack.c.bf16 %v58_v32, %v51_v31  ;;  %v50_v35 = vld [vmem:[#allocation2] sm:$0xff]  ;;  %v67_v41 = vpack.c.bf16 %v60_v40, %v53_v39  ;;  %v983_v42 = vld [vmem:[#allocation5 + $0x100] sm:$0xff]   ;;  %v59_v45 = vld [vmem:[#allocation2 + $0x48] sm:$0xff] }
  0x35   :  { %843 = vmatpush3.bf16.msra.mxu0 %v963_v13  ;;  %v64_v37 = vpack.c.bf16 %v57_v36, %v50_v35  ;;  %v52_v44 = vld [vmem:[#allocation2 + $0x10] sm:$0xff]  ;;  %v984_v47 = vld [vmem:[#allocation5 + $0x148] sm:$0xff]   ;;  %v986_v49 = vld [vmem:[#allocation5 + $0x150] sm:$0xff]  }
  0x36   :  { %844 = vmatprep.subr.bf16.mxu0 %v966_v16  ;;  %506 = vmatprep.mubr.bf16.mxu0 %v65_v33  ;;  %v66_v46 = vpack.c.bf16 %v59_v45, %v52_v44  ;;  %v985_v48 = vld [vmem:[#allocation5 + $0x108] sm:$0xff]   ;;  %v987_v50 = vld [vmem:[#allocation5 + $0x110] sm:$0xff]   ;;  %v988_v51 = vld [vmem:[#allocation5 + $0x158] sm:$0xff]  }
  0x37   :  { %865 = vmatpush3.bf16.msra.mxu1 %v965_v15  ;;  %547 = vmatprep.mubr.bf16.mxu1 %v67_v41  ;;  %v989_v52 = vld [vmem:[#allocation5 + $0x118] sm:$0xff]   ;;  %v990_v53 = vld [vmem:[#allocation5 + $0x160] sm:$0xff]   ;;  %v992_v55 = vld [vmem:[#allocation5 + $0x168] sm:$0xff]  }
  0x38   :  { %866 = vmatprep.subr.bf16.mxu1 %v968_v18  ;;  %v991_v54 = vld [vmem:[#allocation5 + $0x120] sm:$0xff]   ;;  %v55_v57 = vld [vmem:[#allocation2 + $0x28] sm:$0xff]  ;;  %v993_v58 = vld [vmem:[#allocation5 + $0x128] sm:$0xff]  }
  0x39   :  { %845 = vmatpush3.bf16.msra.mxu0 %v967_v17  ;;  %v998_v56 = vld [vmem:[#allocation5 + $0x180] sm:$0xff]   ;;  %v994_v59 = vld [vmem:[#allocation5 + $0x170] sm:$0xff]   ;;  %v63_v63 = vld [vmem:[#allocation2 + $0x68] sm:$0xff] }
  0x3a   :  { %846 = vmatprep.subr.bf16.mxu0 %v970_v20  ;;  %v62_v60 = vld [vmem:[#allocation2 + $0x60] sm:$0xff]  ;;  %v56_v62 = vld [vmem:[#allocation2 + $0x30] sm:$0xff]  ;;  %v996_v2 = vld [vmem:[#allocation5 + $0x178] sm:$0xff]  }
  0x3b   :  { %867 = vmatpush3.bf16.msra.mxu1 %v969_v19  ;;  %v69_v61 = vpack.c.bf16 %v62_v60, %v55_v57  ;;  %v70_v0 = vpack.c.bf16 %v63_v63, %v56_v62  ;;  %v995_v1 = vld [vmem:[#allocation5 + $0x130] sm:$0xff]   ;;  %v997_v3 = vld [vmem:[#allocation5 + $0x138] sm:$0xff]   ;;  %v61_v5 = vld [vmem:[#allocation2 + $0x58] sm:$0xff] }
  0x3c   :  { %868 = vmatprep.subr.bf16.mxu1 %v972_v22  ;;  %v54_v4 = vld [vmem:[#allocation2 + $0x20] sm:$0xff]  ;;  %v1000_v8 = vld [vmem:[%s1202_s3 + $0x8] sm:$0xff]   ;;  %v1001_v9 = vld [vmem:[%s1202_s3 + $0x10] sm:$0xff]  }
  0x3d   :  { %847 = vmatpush3.bf16.msra.mxu0 %v971_v21  ;;  %v68_v6 = vpack.c.bf16 %v61_v5, %v54_v4  ;;  %v999_v7 = vld [vmem:[%s1202_s3] sm:$0xff]   ;;  %v1002_v10 = vld [vmem:[%s1202_s3 + $0x18] sm:$0xff]   ;;  %v1004_v12 = vld [vmem:[%s1202_s3 + $0x28] sm:$0xff]  }
  0x3e   :  { %848 = vmatprep.subr.bf16.mxu0 %v974_v24  ;;  %v1003_v11 = vld [vmem:[%s1202_s3 + $0x20] sm:$0xff]   ;;  %v1005_v13 = vld [vmem:[%s1202_s3 + $0x30] sm:$0xff]   ;;  %v1006_v14 = vld [vmem:[%s1202_s3 + $0x38] sm:$0xff]  }
  0x3f   :  { %869 = vmatpush3.bf16.msra.mxu1 %v973_v23  ;;  %v776_v16 = vld [vmem:[%s1201_s2] ss:$0 sm:$0xff] }
  0x40   :  { %870 = vmatprep.subr.bf16.mxu1 %v976_v26 }
  0x41   :  { %849 = vmatpush3.bf16.msra.mxu0 %v975_v25 }
  0x42   :  { %850 = vmatprep.subr.bf16.mxu0 %v978_v28 }
  0x43   :  { %871 = vmatpush3.bf16.msra.mxu1 %v977_v27 }
  0x44   :  { %872 = vmatprep.subr.bf16.mxu1 %v980_v30 }
  0x45   :  { %851 = vmatpush3.bf16.msra.mxu0 %v979_v29 }
  0x46   :  { %880 = vmatprep.subr.bf16.mxu0 %v982_v38 }
  0x47   :  { %873 = vmatpush3.bf16.msra.mxu1 %v981_v34 }
  0x48   :  { %913 = vmatprep.subr.bf16.mxu1 %v1085_v43  ;;  %507 = vmatmul.mubr.bf16.vlgmr.msra.gmra.mrb[0].mxu0 %v64_v37 }
  0x49   :  { %881 = vmatpush3.bf16.msra.mxu0 %v983_v42  ;;  %588 = vmatprep.mubr.bf16.mxu0 %v69_v61 }
  0x4a   :  { %548 = vmatmul.mubr.bf16.vlgmr.msra.gmra.mrb[0].mxu1 %v66_v46  ;;  %882 = vmatprep.subr.bf16.mxu0 %v984_v47 }
  0x4b   :  { %915 = vmatprep.mubr.msk.bf16.mxu1 %vm1086_vm0, %v1085_v43  ;;  %914 = vmatpush3.bf16.msra.mxu1 %v998_v56 }
  0x4c   :  { %919 = vmatprep.subr.bf16.mxu1 %v1085_v43 }
  0x4d   :  { %883 = vmatpush3.bf16.msra.mxu0 %v985_v48 }
  0x4e   :  { %884 = vmatprep.subr.bf16.mxu0 %v986_v49  ;;  %v827_v49 = vld [vmem:[%s1203_s4] ss:$0 sm:$0xff] }
  0x51   :  { %885 = vmatpush3.bf16.msra.mxu0 %v987_v50 }
  0x52   :  { %886 = vmatprep.subr.bf16.mxu0 %v988_v51  ;;  %916 = vmatmul.mubr.msk.bf16.vlgmr.msra.gmra.mrb[4].mxu1 %vm470_vm1, %v70_v0 }
  0x53   :  { %935 = vmatprep.mubr.msk.bf16.mxu1 %vm1086_vm0, %v1085_v43  ;;  %920 = vmatpush3.bf16.msra.mxu1 %v999_v7 }
  0x54   :  { %921 = vmatprep.subr.bf16.mxu1 %v1085_v43 }
  0x55   :  { %887 = vmatpush3.bf16.msra.mxu0 %v989_v52 }
  0x56   :  { %888 = vmatprep.subr.bf16.mxu0 %v990_v53 }
  0x57   :  { %922 = vmatpush3.bf16.msra.mxu1 %v1000_v8 }
  0x58   :  { %923 = vmatprep.subr.bf16.mxu1 %v1085_v43 }
  0x59   :  { %889 = vmatpush3.bf16.msra.mxu0 %v991_v54 }
  0x5a   :  { %890 = vmatprep.subr.bf16.mxu0 %v992_v55 }
  0x5b   :  { %924 = vmatpush3.bf16.msra.mxu1 %v1001_v9 }
  0x5c   :  { %925 = vmatprep.subr.bf16.mxu1 %v1085_v43 }
  0x5d   :  { %891 = vmatpush3.bf16.msra.mxu0 %v993_v58 }
  0x5e   :  { %892 = vmatprep.subr.bf16.mxu0 %v994_v59 }
  0x5f   :  { %926 = vmatpush3.bf16.msra.mxu1 %v1002_v10 }
  0x60   :  { %927 = vmatprep.subr.bf16.mxu1 %v1085_v43 }
  0x61   :  { %893 = vmatpush3.bf16.msra.mxu0 %v995_v1 }
  0x62   :  { %894 = vmatprep.subr.bf16.mxu0 %v996_v2 }
  0x63   :  { %928 = vmatpush3.bf16.msra.mxu1 %v1003_v11 }
  0x64   :  { %929 = vmatprep.subr.bf16.mxu1 %v1085_v43 }
  0x65   :  { %895 = vmatpush3.bf16.msra.mxu0 %v997_v3 }
  0x67   :  { %930 = vmatpush3.bf16.msra.mxu1 %v1004_v12 }
  0x68   :  { %589 = vmatmul.mubr.bf16.vlgmr.msra.gmra.mrb[4].mxu0 %v68_v6  ;;  %931 = vmatprep.subr.bf16.mxu1 %v1085_v43 }
  0x6b   :  { %932 = vmatpush3.bf16.msra.mxu1 %v1005_v13 }
  0x6c   :  { %933 = vmatprep.subr.bf16.mxu1 %v1085_v43 }
  0x6f   :  { %934 = vmatpush3.bf16.msra.mxu1 %v1006_v14 }
 0x11b   :  { %v852_v15 = vpop.f32.mrb[0].mxu0 }
 0x11c   :  { %v853_v17 = vpop.f32.mrb[1].mxu0 }
 0x11d   :  { %v854_v18 = vadd.f32 %v853_v17, %v852_v15  ;;  %v855_v19 = vpop.f32.mrb[2].mxu0  ;;  %v874_v20 = vpop.f32.mrb[0].mxu1 }
 0x11e   :  { %v856_v21 = vpop.f32.mrb[3].mxu0  ;;  %v875_v24 = vpop.f32.mrb[1].mxu1 }
 0x11f   :  { %v509_v22 = vadd.f32 %v854_v18, %v776_v16  ;;  %v857_v23 = vadd.f32 %v856_v21, %v855_v19  ;;  %v876_v25 = vadd.f32 %v875_v24, %v874_v20  ;;  %v877_v26 = vpop.f32.mrb[2].mxu1 }
 0x120   :  { %v878_v28 = vpop.f32.mrb[3].mxu1 }
 0x121   :  { %v512_v27 = vadd.f32 %v857_v23, %v776_v16  ;;  %v550_v29 = vadd.f32 %v876_v25, %v509_v22  ;;  %v879_v30 = vadd.f32 %v878_v28, %v877_v26 }
 0x123   :  { %v553_v31 = vadd.f32 %v879_v30, %v512_v27 }
 0x125   :  { %v631_v32 = vpop.f32.mrb[4].mxu1 }
 0x126   :  { %v917_v33 = vpop.f32.mrb[5].mxu1 }
 0x127   :  { %v634_v34 = vpop.f32.mrb[6].mxu1 }
 0x128   :  { %v918_v35 = vpop.f32.mrb[7].mxu1 }
 0x13b   :  { %v896_v36 = vpop.f32.mrb[4].mxu0 }
 0x13c   :  { %v897_v37 = vpop.f32.mrb[5].mxu0 }
 0x13d   :  { %v898_v38 = vadd.f32 %v897_v37, %v896_v36  ;;  %v899_v39 = vpop.f32.mrb[6].mxu0 }
 0x13e   :  { %v900_v40 = vpop.f32.mrb[7].mxu0 }
 0x13f   :  { %v591_v41 = vadd.f32 %v898_v38, %v550_v29  ;;  %v901_v42 = vadd.f32 %v900_v40, %v899_v39 }
 0x141   :  { %v632_v43 = vadd.f32 %v631_v32, %v591_v41  ;;  %v594_v44 = vadd.f32 %v901_v42, %v553_v31 }
 0x143   :  { %v635_v45 = vadd.f32 %v634_v34, %v594_v44  ;;  %v638_v46 = vmax.f32 %v632_v43, 0.0 }
 0x145   :  { %v639_v47 = vmax.f32 %v635_v45, 0.0 }
 0x147   :  { %v640_v48 = vpack.c.bf16 %v639_v47, %v638_v46 }
 0x149   :  { %936 = vmatmul.mubr.bf16.vlgmr.msra.gmra.mrb[8].mxu1 %v640_v48 }
 0x21c   :  { %v746_v50 = vpop.f32.mrb[8].mxu1 }
 0x21d   :  { %v747_v51 = vadd.f32 %v827_v49, %v746_v50  ;;  %v937_v52 = vpop.f32.mrb[9].mxu1 }
 0x21e   :  { %v749_v53 = vpop.f32.mrb[10].mxu1 }
 0x21f   :  { %v753_v54 = vmax.f32 %v747_v51, 0.0  ;;  %v750_v55 = vadd.f32 %v827_v49, %v749_v53  ;;  %v938_v56 = vpop.f32.mrb[11].mxu1 }
 0x221   :  { %756 = vst.msk [vmem:[#allocation7] sm:$0xff] %vm755_vm2, %v753_v54  ;;  %v754_v57 = vmax.f32 %v750_v55, 0.0 }
 0x223   :  { %757 = vst.msk [vmem:[#allocation7 + $0x8] sm:$0xff] %vm755_vm2, %v754_v57 }
 0x224   :  { %1062 = shalt.err (!%p1059_p6)
}
 0x225   :  { %s1063_s16 = scalar_lea.hbm %s1204_s5, 256 }
 0x226   :  { %p1064_p7 = scmp.ne.s32.totalorder %s1204_s5, %s1063_s16  ;;  %p1067_p8 = scmp.lt.u32.totalorder %s1063_s16, %s1204_s5 }
 0x228   :  { %p1069_p9 = pnand %p1067_p8, %p1064_p7 }
 0x22a   :  { %1072 = shalt.err (!%p1069_p9)
}
 0x22b   :  { %s1088_s1 = smov 128   ;;  %s1089_s20 = smov 8  }
 0x22c   :  { %769 = dma.vmem_to_hbm [thread:$0]  %s764_s13, 256, %s1204_s5, [#allocation4], %s1088_s1, %s1088_s1, %s1089_s20  }
 0x22d   :  { %1077 = dma.done.wait [#allocation4], 256  }
 0x22e   :  { %1078 = vsyncadd [#allocation4], 4294967040 }
 0x22f   :  { %773 = vsyncpa [#allocation3], 1 }
 0x230   :  { %774 = vsyncpa [#allocation6], 1 }
 0x231   :  { %775 = vsyncpa [#allocation4], 1 }

</bundles_post_ra>
